<compile_context>
chip_gen: v5e
topology: v5e:2x2
jax: 0.10.0
libtpu: 0.0.40
codegen_flags: <defaults>
</compile_context>

<pallas_src>
import functools
import math

import jax
import jax.numpy as jnp
from jax.experimental import pallas as pl
from jax.experimental.pallas import tpu as pltpu


def _pick_batch_block(B, L, target_rows=512):
    """Largest divisor of B such that Bb*L stays ~<= target_rows and (when B >= 2) the
    grid has at least 2 steps (enables pipelining and v7x 2-TC sharding)."""
    cap = max(1, target_rows // max(L, 1))
    if B >= 2:
        cap = min(cap, B // 2)
    cap = max(cap, 1)
    bb = 1
    for d in range(1, B + 1):
        if B % d == 0 and d <= cap:
            bb = d
    return bb


def _conv_gelu_kernel(x_ref, m_ref, w_ref, b_ref, o_ref, *, K, pad, use_im2col):
    """Fused masked_fill + 'same' Conv1d (all kernel_size branches) + bias + tanh-GeLU.

    x_ref : (Bb, L, C_in)      channels-last activation block
    m_ref : (Bb, L, 1)         mask (1.0 = keep, 0.0 = zero-fill)
    w_ref : (K, C_in, C_out)   fused, weight-normed, tap-padded filters (compute dtype)
    b_ref : (1, C_out)         fused bias (f32)
    o_ref : (Bb, L, C_out)     output block (exactly hidden_size channels, no lane padding)
    """
    cdt = w_ref.dtype
    Bb, L, C_in = x_ref.shape
    C_out = o_ref.shape[-1]
    M = Bb * L

    # masked_fill_(~mask, 0) fused in; everything below stays in registers (no scratch).
    xm = x_ref[...].astype(cdt) * m_ref[...].astype(cdt)

    def tap(s):
        # tap[:, t, :] = xm[:, t + s, :] for 0 <= t + s < L, else 0.
        # Pure in-register slice + concat along the sublane (L) axis.
        if s == 0:
            return xm
        z = jnp.zeros((Bb, abs(s), C_in), cdt)
        if s > 0:
            return jnp.concatenate([xm[:, s:, :], z], axis=1)
        return jnp.concatenate([z, xm[:, :L + s, :]], axis=1)

    if use_im2col:
        # Lane-aligned C_in: one big MXU matmul over the K*C_in contraction.
        x_unf = jnp.concatenate([tap(dk - pad) for dk in range(K)], axis=-1)
        acc = jnp.dot(x_unf.reshape(M, K * C_in),
                      w_ref[...].reshape(K * C_in, C_out),
                      preferred_element_type=jnp.float32)
    else:
        # C_in not a multiple of 128: K accumulating dots keep operands lane-aligned
        # and avoid materializing the K-times im2col temporary.
        acc = jnp.zeros((M, C_out), jnp.float32)
        for dk in range(K):
            acc = acc + jnp.dot(tap(dk - pad).reshape(M, C_in), w_ref[dk],
                                preferred_element_type=jnp.float32)

    y = acc + b_ref[...]
    # GeLU exactly as in the PyTorch module (tanh form; tanh goes to the EUP slot).
    # TODO(synk): on v6e/v7x this elementwise block could run in bf16 to cut VPU work.
    y = 0.5 * y * (1.0 + jnp.tanh(y * 0.7978845608 * (1.0 + 0.044715 * y * y)))
    o_ref[...] = y.reshape(Bb, L, C_out).astype(o_ref.dtype)


def _conv1d_layer(x, mask_c, W, bias, *, out_dtype):
    """One fused Conv1d layer: (B, L, C_in) -> (B, L, C_out), channels-last."""
    B, L, C_in = x.shape
    K, _, C_out = W.shape
    pad = (K - 1) // 2
    Bb = _pick_batch_block(B, L)
    use_im2col = (C_in % 128 == 0)

    kernel = functools.partial(_conv_gelu_kernel, K=K, pad=pad, use_im2col=use_im2col)
    return pl.pallas_call(
        kernel,
        out_shape=jax.ShapeDtypeStruct((B, L, C_out), out_dtype),
        grid=(B // Bb,),
        in_specs=[
            pl.BlockSpec((Bb, L, C_in), lambda i: (i, 0, 0)),
            pl.BlockSpec((Bb, L, 1), lambda i: (i, 0, 0)),
            pl.BlockSpec((K, C_in, C_out), lambda i: (0, 0, 0)),   # resident across grid
            pl.BlockSpec((1, C_out), lambda i: (0, 0)),            # resident across grid
        ],
        out_specs=pl.BlockSpec((Bb, L, C_out), lambda i: (i, 0, 0)),
        compiler_params=pltpu.CompilerParams(
            dimension_semantics=("parallel",),        # shards across v7x's 2 TCs
            vmem_limit_bytes=32 * 1024 * 1024,        # explicit: fits v5e/v6e/v7x scoped VMEM
        ),
    )(x, mask_c, W, bias)


def fuse_encoder_params(params, kernel_sizes, compute_dtype):
    """One-time (per checkpoint / dtype) fusion of all weight-normed branches.

    Returns, per layer, (W, bias) with W of shape (K_max, C_in, hidden) in compute_dtype
    and bias (1, hidden) in f32.  Branch with kernel size k is centered at tap
    (K_max - k)//2 so the shared halo of (K_max-1)//2 reproduces each branch's own
    'same' padding exactly.  HOISTED out of the per-forward path.
    """
    kernel_sizes = tuple(int(k) for k in kernel_sizes)
    assert all(k % 2 == 1 for k in kernel_sizes), \
        "even kernel sizes do not give 'same'-length output (as in the PyTorch module)"
    k_max = max(kernel_sizes)
    fused = []
    for layer_params in params:
        c_in = layer_params[0][0].shape[1]
        hidden = sum(v.shape[0] for (v, _, _) in layer_params)
        W = jnp.zeros((k_max, c_in, hidden), jnp.float32)
        bias = jnp.zeros((1, hidden), jnp.float32)
        col = 0
        for (v, g, b), k in zip(layer_params, kernel_sizes):
            c_out_b = v.shape[0]
            # weight_norm in f32: w = g * v / ||v||, norm over (in_channels, kernel).
            norm = jnp.sqrt(jnp.sum(v * v, axis=(1, 2), keepdims=True))
            w_eff = g[:, None, None] * v / norm                  # (c_out_b, c_in, k)
            w_kio = jnp.transpose(w_eff, (2, 1, 0))              # (k, c_in, c_out_b)
            tap0 = (k_max - k) // 2
            W = W.at[tap0:tap0 + k, :, col:col + c_out_b].set(w_kio)
            bias = bias.at[0, col:col + c_out_b].set(b)
            col += c_out_b
        fused.append((W.astype(compute_dtype), bias))
    return fused


def encoder_forward(x, mask, fused_params, *, out_dtype=None):
    """Pallas equivalent of Encoder.forward (eval mode).

    x: (B, L, input_size); mask: (B, L, 1) bool (True = valid token).
    fused_params: output of fuse_encoder_params (built once, outside the forward).
    Intermediate activations are carried in the weights' compute dtype (e.g. bf16);
    only the last layer casts back to out_dtype.
    """
    out_dtype = x.dtype if out_dtype is None else out_dtype
    compute_dtype = fused_params[0][0].dtype
    mask_c = mask.astype(compute_dtype)               # small, lane-padded operand: keep narrow
    h = x
    n = len(fused_params)
    for li, (W, bias) in enumerate(fused_params):
        layer_out = out_dtype if li == n - 1 else compute_dtype
        # TODO(synk): training-mode dropout between layers not implemented (eval = identity).
        h = _conv1d_layer(h, mask_c, W, bias, out_dtype=layer_out)
    return h


def make_encoder_params(key, input_size, hidden_size, kernel_sizes, encoder_layers):
    """Deterministic synthetic weight_norm params mirroring the module's __init__ shapes."""
    n = len(kernel_sizes)
    c_out = hidden_size // n
    params = []
    for layer in range(encoder_layers):
        c_in = input_size if layer == 0 else hidden_size
        branches = []
        for i, k in enumerate(kernel_sizes):
            kv, kg = jax.random.split(jax.random.fold_in(key, layer * 131 + i))
            std = math.sqrt(2.0 / (c_in * int(k)))
            v = jax.random.normal(kv, (c_out, c_in, int(k)), jnp.float32) * std
            g = 1.0 + 0.1 * jax.random.normal(kg, (c_out,), jnp.float32)
            b = jnp.zeros((c_out,), jnp.float32)      # nn.init.zeros_(conv.bias)
            branches.append((v, g, b))
        params.append(branches)
    return params


def _gelu(x):
    return 0.5 * x * (1.0 + jnp.tanh(x * 0.7978845608 * (1.0 + 0.044715 * x * x)))


def _reference_forward(x, mask, params, kernel_sizes):
    """Pure-JAX f32 reference mirroring the PyTorch Encoder (eval mode)."""
    h = jnp.transpose(x, (0, 2, 1))                  # (B, C, L)
    m = jnp.transpose(mask, (0, 2, 1))               # (B, 1, L)
    for layer_params in params:
        h = jnp.where(m, h, 0.0)
        outs = []
        for (v, g, b), k in zip(layer_params, kernel_sizes):
            norm = jnp.sqrt(jnp.sum(v * v, axis=(1, 2), keepdims=True))
            w_eff = g[:, None, None] * v / norm
            pad = (int(k) - 1) // 2
            y = jax.lax.conv_general_dilated(
                h, w_eff, window_strides=(1,), padding=[(pad, pad)],
                dimension_numbers=("NCH", "OIH", "NCH"),
                precision=jax.lax.Precision.HIGHEST,
            ) + b[None, :, None]
            outs.append(_gelu(y))
        h = jnp.concatenate(outs, axis=1)
    return jnp.transpose(h, (0, 2, 1))               # (B, L, hidden)


if __name__ == "__main__":
    key = jax.random.PRNGKey(0)
    B, L = 2, 16
    input_size, hidden_size = 32, 64
    kernel_sizes = (1, 3)
    encoder_layers = 2

    kx, kp = jax.random.split(key)
    x = jax.random.normal(kx, (B, L, input_size), jnp.float32)
    lengths = jnp.array([L, L - 5])
    mask = jnp.arange(L)[None, :, None] < lengths[:, None, None]     # (B, L, 1) bool
    params = make_encoder_params(kp, input_size, hidden_size, kernel_sizes, encoder_layers)

    # Weight-norm fusion hoisted out of the per-forward path (once per dtype).
    fused_f32 = fuse_encoder_params(params, kernel_sizes, jnp.float32)
    fused_bf16 = fuse_encoder_params(params, kernel_sizes, jnp.bfloat16)

    fwd = jax.jit(encoder_forward)
    y32 = jax.block_until_ready(fwd(x, mask, fused_f32))     # f32 carry (accuracy check)
    y16 = jax.block_until_ready(fwd(x, mask, fused_bf16))    # bf16 carry (fast path)
    y_ref = _reference_forward(x, mask, params, kernel_sizes)

    assert y32.shape == (B, L, hidden_size), y32.shape
    assert y16.shape == (B, L, hidden_size), y16.shape
    assert y16.dtype == x.dtype, y16.dtype
    # f32 path: f32 MXU inputs, f32 accumulation (MXU pass precision may be reduced).
    assert jnp.allclose(y32, y_ref, atol=3e-2, rtol=3e-2), "f32 kernel mismatch vs reference"
    # bf16 fast path: bf16 inputs + bf16 inter-layer carry, f32 accumulation.
    assert float(jnp.max(jnp.abs(y16 - y_ref))) < 1.5e-1, "bf16 kernel deviates too much"

    print("KERNEL_OK")
</pallas_src>

<mosaic_0001>
module attributes {stable_mosaic.version = 11 : i64} {
  func.func @_conv_gelu_kernel(%arg0: i32, %arg1: memref<1x16x32xf32, #tpu.memory_space<vmem>>, %arg2: memref<1x16x1xf32, #tpu.memory_space<vmem>>, %arg3: memref<3x32x64xf32, #tpu.memory_space<vmem>>, %arg4: memref<1x64xf32, #tpu.memory_space<vmem>>, %arg5: memref<1x16x64xf32, #tpu.memory_space<vmem>>) attributes {dimension_semantics = [#tpu.dimension_semantics<parallel>], iteration_bounds = array<i64: 2>, scalar_prefetch = 0 : i64, scratch_operands = 0 : i64, tpu.core_type = #tpu.core_type<tc>, window_params = [{transform_indices = @transform_0, window_bounds = array<i64: 1, 16, 32>}, {transform_indices = @transform_1, window_bounds = array<i64: 1, 16, 1>}, {pipeline_mode = #tpu.pipeline_mode<synchronous>, transform_indices = @transform_2, window_bounds = array<i64: 3, 32, 64>}, {pipeline_mode = #tpu.pipeline_mode<synchronous>, transform_indices = @transform_3, window_bounds = array<i64: 1, 64>}, {transform_indices = @transform_4, window_bounds = array<i64: 1, 16, 64>}]} {
    %c0 = arith.constant 0 : index
    %c0_0 = arith.constant 0 : index
    %c0_1 = arith.constant 0 : index
    %0 = vector.load %arg1[%c0, %c0_0, %c0_1] : memref<1x16x32xf32, #tpu.memory_space<vmem>>, vector<1x16x32xf32>
    %c0_2 = arith.constant 0 : index
    %c0_3 = arith.constant 0 : index
    %c0_4 = arith.constant 0 : index
    %1 = vector.load %arg2[%c0_2, %c0_3, %c0_4] : memref<1x16x1xf32, #tpu.memory_space<vmem>>, vector<1x16x1xf32>
    %2 = vector.broadcast %1 : vector<1x16x1xf32> to vector<1x16x32xf32>
    %3 = arith.mulf %0, %2 : vector<1x16x32xf32>
    %cst = arith.constant 0.000000e+00 : f32
    %4 = vector.broadcast %cst : f32 to vector<16x64xf32>
    %cst_5 = arith.constant 0.000000e+00 : f32
    %5 = vector.broadcast %cst_5 : f32 to vector<1x1x32xf32>
    %6 = vector.extract_strided_slice %3 {offsets = [0, 0, 0], sizes = [1, 15, 32], strides = [1, 1, 1]} : vector<1x16x32xf32> to vector<1x15x32xf32>
    %7 = tpu.concatenate %5, %6 in 1 : vector<1x1x32xf32>, vector<1x15x32xf32> -> vector<1x16x32xf32>
    %8 = vector.shape_cast %7 : vector<1x16x32xf32> to vector<16x32xf32>
    %c0_6 = arith.constant 0 : index
    %c0_7 = arith.constant 0 : index
    %c0_8 = arith.constant 0 : index
    %9 = vector.load %arg3[%c0_6, %c0_7, %c0_8] : memref<3x32x64xf32, #tpu.memory_space<vmem>>, vector<1x32x64xf32>
    %10 = vector.shape_cast %9 : vector<1x32x64xf32> to vector<32x64xf32>
    %cst_9 = arith.constant dense<0.000000e+00> : vector<16x64xf32>
    %11 = tpu.matmul %8, %10, %cst_9 {dimension_numbers = #tpu.dot_dimension_numbers<[1], [0], [0], [1], [0, 0, 1, 1], [], []>} : vector<16x32xf32>, vector<32x64xf32>, vector<16x64xf32> -> vector<16x64xf32>
    %12 = arith.addf %4, %11 : vector<16x64xf32>
    %13 = vector.shape_cast %3 : vector<1x16x32xf32> to vector<16x32xf32>
    %c1 = arith.constant 1 : index
    %c0_10 = arith.constant 0 : index
    %c0_11 = arith.constant 0 : index
    %14 = vector.load %arg3[%c1, %c0_10, %c0_11] : memref<3x32x64xf32, #tpu.memory_space<vmem>>, vector<1x32x64xf32>
    %15 = vector.shape_cast %14 : vector<1x32x64xf32> to vector<32x64xf32>
    %cst_12 = arith.constant dense<0.000000e+00> : vector<16x64xf32>
    %16 = tpu.matmul %13, %15, %cst_12 {dimension_numbers = #tpu.dot_dimension_numbers<[1], [0], [0], [1], [0, 0, 1, 1], [], []>} : vector<16x32xf32>, vector<32x64xf32>, vector<16x64xf32> -> vector<16x64xf32>
    %17 = arith.addf %12, %16 : vector<16x64xf32>
    %cst_13 = arith.constant 0.000000e+00 : f32
    %18 = vector.broadcast %cst_13 : f32 to vector<1x1x32xf32>
    %19 = vector.extract_strided_slice %3 {offsets = [0, 1, 0], sizes = [1, 15, 32], strides = [1, 1, 1]} : vector<1x16x32xf32> to vector<1x15x32xf32>
    %20 = tpu.concatenate %19, %18 in 1 : vector<1x15x32xf32>, vector<1x1x32xf32> -> vector<1x16x32xf32>
    %21 = vector.shape_cast %20 : vector<1x16x32xf32> to vector<16x32xf32>
    %c2 = arith.constant 2 : index
    %c0_14 = arith.constant 0 : index
    %c0_15 = arith.constant 0 : index
    %22 = vector.load %arg3[%c2, %c0_14, %c0_15] : memref<3x32x64xf32, #tpu.memory_space<vmem>>, vector<1x32x64xf32>
    %23 = vector.shape_cast %22 : vector<1x32x64xf32> to vector<32x64xf32>
    %cst_16 = arith.constant dense<0.000000e+00> : vector<16x64xf32>
    %24 = tpu.matmul %21, %23, %cst_16 {dimension_numbers = #tpu.dot_dimension_numbers<[1], [0], [0], [1], [0, 0, 1, 1], [], []>} : vector<16x32xf32>, vector<32x64xf32>, vector<16x64xf32> -> vector<16x64xf32>
    %25 = arith.addf %17, %24 : vector<16x64xf32>
    %c0_17 = arith.constant 0 : index
    %c0_18 = arith.constant 0 : index
    %26 = vector.load %arg4[%c0_17, %c0_18] : memref<1x64xf32, #tpu.memory_space<vmem>>, vector<1x64xf32>
    %27 = vector.broadcast %26 : vector<1x64xf32> to vector<16x64xf32>
    %28 = arith.addf %25, %27 : vector<16x64xf32>
    %cst_19 = arith.constant 5.000000e-01 : f32
    %29 = vector.broadcast %cst_19 : f32 to vector<16x64xf32>
    %30 = arith.mulf %29, %28 : vector<16x64xf32>
    %cst_20 = arith.constant 0.797884583 : f32
    %31 = vector.broadcast %cst_20 : f32 to vector<16x64xf32>
    %32 = arith.mulf %28, %31 : vector<16x64xf32>
    %cst_21 = arith.constant 4.471500e-02 : f32
    %33 = vector.broadcast %cst_21 : f32 to vector<16x64xf32>
    %34 = arith.mulf %33, %28 : vector<16x64xf32>
    %35 = arith.mulf %34, %28 : vector<16x64xf32>
    %cst_22 = arith.constant 1.000000e+00 : f32
    %36 = vector.broadcast %cst_22 : f32 to vector<16x64xf32>
    %37 = arith.addf %36, %35 : vector<16x64xf32>
    %38 = arith.mulf %32, %37 : vector<16x64xf32>
    %39 = math.tanh %38 : vector<16x64xf32>
    %cst_23 = arith.constant 1.000000e+00 : f32
    %40 = vector.broadcast %cst_23 : f32 to vector<16x64xf32>
    %41 = arith.addf %40, %39 : vector<16x64xf32>
    %42 = arith.mulf %30, %41 : vector<16x64xf32>
    %43 = vector.shape_cast %42 : vector<16x64xf32> to vector<1x16x64xf32>
    %c0_24 = arith.constant 0 : index
    %c0_25 = arith.constant 0 : index
    %c0_26 = arith.constant 0 : index
    %44 = vector.load %arg5[%c0_24, %c0_25, %c0_26] : memref<1x16x64xf32, #tpu.memory_space<vmem>>, vector<1x16x64xf32>
    tpu.vector_store %arg5[%c0_24, %c0_25, %c0_26], %43 {strides = array<i32>} : memref<1x16x64xf32, #tpu.memory_space<vmem>>, vector<1x16x64xf32>,
    return
  }
  func.func @transform_0(%arg0: i32) -> (i32, i32, i32) {
    %c0_i32 = arith.constant 0 : i32
    %c0_i32_0 = arith.constant 0 : i32
    %c0_i32_1 = arith.constant 0 : i32
    return %arg0, %c0_i32, %c0_i32_0 : i32, i32, i32
  }
  func.func @transform_1(%arg0: i32) -> (i32, i32, i32) {
    %c0_i32 = arith.constant 0 : i32
    %c0_i32_0 = arith.constant 0 : i32
    %c0_i32_1 = arith.constant 0 : i32
    return %arg0, %c0_i32, %c0_i32_0 : i32, i32, i32
  }
  func.func @transform_2(%arg0: i32) -> (i32, i32, i32) {
    %c0_i32 = arith.constant 0 : i32
    %c0_i32_0 = arith.constant 0 : i32
    %c0_i32_1 = arith.constant 0 : i32
    %c0_i32_2 = arith.constant 0 : i32
    return %c0_i32, %c0_i32_0, %c0_i32_1 : i32, i32, i32
  }
  func.func @transform_3(%arg0: i32) -> (i32, i32) {
    %c0_i32 = arith.constant 0 : i32
    %c0_i32_0 = arith.constant 0 : i32
    %c0_i32_1 = arith.constant 0 : i32
    return %c0_i32, %c0_i32_0 : i32, i32
  }
  func.func @transform_4(%arg0: i32) -> (i32, i32, i32) {
    %c0_i32 = arith.constant 0 : i32
    %c0_i32_0 = arith.constant 0 : i32
    %c0_i32_1 = arith.constant 0 : i32
    return %arg0, %c0_i32, %c0_i32_0 : i32, i32, i32
  }
}

module attributes {stable_mosaic.version = 11 : i64} {
  func.func @_conv_gelu_kernel(%arg0: i32, %arg1: memref<1x16x64xf32, #tpu.memory_space<vmem>>, %arg2: memref<1x16x1xf32, #tpu.memory_space<vmem>>, %arg3: memref<3x64x64xf32, #tpu.memory_space<vmem>>, %arg4: memref<1x64xf32, #tpu.memory_space<vmem>>, %arg5: memref<1x16x64xf32, #tpu.memory_space<vmem>>) attributes {dimension_semantics = [#tpu.dimension_semantics<parallel>], iteration_bounds = array<i64: 2>, scalar_prefetch = 0 : i64, scratch_operands = 0 : i64, tpu.core_type = #tpu.core_type<tc>, window_params = [{transform_indices = @transform_0, window_bounds = array<i64: 1, 16, 64>}, {transform_indices = @transform_1, window_bounds = array<i64: 1, 16, 1>}, {pipeline_mode = #tpu.pipeline_mode<synchronous>, transform_indices = @transform_2, window_bounds = array<i64: 3, 64, 64>}, {pipeline_mode = #tpu.pipeline_mode<synchronous>, transform_indices = @transform_3, window_bounds = array<i64: 1, 64>}, {transform_indices = @transform_4, window_bounds = array<i64: 1, 16, 64>}]} {
    %c0 = arith.constant 0 : index
    %c0_0 = arith.constant 0 : index
    %c0_1 = arith.constant 0 : index
    %0 = vector.load %arg1[%c0, %c0_0, %c0_1] : memref<1x16x64xf32, #tpu.memory_space<vmem>>, vector<1x16x64xf32>
    %c0_2 = arith.constant 0 : index
    %c0_3 = arith.constant 0 : index
    %c0_4 = arith.constant 0 : index
    %1 = vector.load %arg2[%c0_2, %c0_3, %c0_4] : memref<1x16x1xf32, #tpu.memory_space<vmem>>, vector<1x16x1xf32>
    %2 = vector.broadcast %1 : vector<1x16x1xf32> to vector<1x16x64xf32>
    %3 = arith.mulf %0, %2 : vector<1x16x64xf32>
    %cst = arith.constant 0.000000e+00 : f32
    %4 = vector.broadcast %cst : f32 to vector<16x64xf32>
    %cst_5 = arith.constant 0.000000e+00 : f32
    %5 = vector.broadcast %cst_5 : f32 to vector<1x1x64xf32>
    %6 = vector.extract_strided_slice %3 {offsets = [0, 0, 0], sizes = [1, 15, 64], strides = [1, 1, 1]} : vector<1x16x64xf32> to vector<1x15x64xf32>
    %7 = tpu.concatenate %5, %6 in 1 : vector<1x1x64xf32>, vector<1x15x64xf32> -> vector<1x16x64xf32>
    %8 = vector.shape_cast %7 : vector<1x16x64xf32> to vector<16x64xf32>
    %c0_6 = arith.constant 0 : index
    %c0_7 = arith.constant 0 : index
    %c0_8 = arith.constant 0 : index
    %9 = vector.load %arg3[%c0_6, %c0_7, %c0_8] : memref<3x64x64xf32, #tpu.memory_space<vmem>>, vector<1x64x64xf32>
    %10 = vector.shape_cast %9 : vector<1x64x64xf32> to vector<64x64xf32>
    %cst_9 = arith.constant dense<0.000000e+00> : vector<16x64xf32>
    %11 = tpu.matmul %8, %10, %cst_9 {dimension_numbers = #tpu.dot_dimension_numbers<[1], [0], [0], [1], [0, 0, 1, 1], [], []>} : vector<16x64xf32>, vector<64x64xf32>, vector<16x64xf32> -> vector<16x64xf32>
    %12 = arith.addf %4, %11 : vector<16x64xf32>
    %13 = vector.shape_cast %3 : vector<1x16x64xf32> to vector<16x64xf32>
    %c1 = arith.constant 1 : index
    %c0_10 = arith.constant 0 : index
    %c0_11 = arith.constant 0 : index
    %14 = vector.load %arg3[%c1, %c0_10, %c0_11] : memref<3x64x64xf32, #tpu.memory_space<vmem>>, vector<1x64x64xf32>
    %15 = vector.shape_cast %14 : vector<1x64x64xf32> to vector<64x64xf32>
    %cst_12 = arith.constant dense<0.000000e+00> : vector<16x64xf32>
    %16 = tpu.matmul %13, %15, %cst_12 {dimension_numbers = #tpu.dot_dimension_numbers<[1], [0], [0], [1], [0, 0, 1, 1], [], []>} : vector<16x64xf32>, vector<64x64xf32>, vector<16x64xf32> -> vector<16x64xf32>
    %17 = arith.addf %12, %16 : vector<16x64xf32>
    %cst_13 = arith.constant 0.000000e+00 : f32
    %18 = vector.broadcast %cst_13 : f32 to vector<1x1x64xf32>
    %19 = vector.extract_strided_slice %3 {offsets = [0, 1, 0], sizes = [1, 15, 64], strides = [1, 1, 1]} : vector<1x16x64xf32> to vector<1x15x64xf32>
    %20 = tpu.concatenate %19, %18 in 1 : vector<1x15x64xf32>, vector<1x1x64xf32> -> vector<1x16x64xf32>
    %21 = vector.shape_cast %20 : vector<1x16x64xf32> to vector<16x64xf32>
    %c2 = arith.constant 2 : index
    %c0_14 = arith.constant 0 : index
    %c0_15 = arith.constant 0 : index
    %22 = vector.load %arg3[%c2, %c0_14, %c0_15] : memref<3x64x64xf32, #tpu.memory_space<vmem>>, vector<1x64x64xf32>
    %23 = vector.shape_cast %22 : vector<1x64x64xf32> to vector<64x64xf32>
    %cst_16 = arith.constant dense<0.000000e+00> : vector<16x64xf32>
    %24 = tpu.matmul %21, %23, %cst_16 {dimension_numbers = #tpu.dot_dimension_numbers<[1], [0], [0], [1], [0, 0, 1, 1], [], []>} : vector<16x64xf32>, vector<64x64xf32>, vector<16x64xf32> -> vector<16x64xf32>
    %25 = arith.addf %17, %24 : vector<16x64xf32>
    %c0_17 = arith.constant 0 : index
    %c0_18 = arith.constant 0 : index
    %26 = vector.load %arg4[%c0_17, %c0_18] : memref<1x64xf32, #tpu.memory_space<vmem>>, vector<1x64xf32>
    %27 = vector.broadcast %26 : vector<1x64xf32> to vector<16x64xf32>
    %28 = arith.addf %25, %27 : vector<16x64xf32>
    %cst_19 = arith.constant 5.000000e-01 : f32
    %29 = vector.broadcast %cst_19 : f32 to vector<16x64xf32>
    %30 = arith.mulf %29, %28 : vector<16x64xf32>
    %cst_20 = arith.constant 0.797884583 : f32
    %31 = vector.broadcast %cst_20 : f32 to vector<16x64xf32>
    %32 = arith.mulf %28, %31 : vector<16x64xf32>
    %cst_21 = arith.constant 4.471500e-02 : f32
    %33 = vector.broadcast %cst_21 : f32 to vector<16x64xf32>
    %34 = arith.mulf %33, %28 : vector<16x64xf32>
    %35 = arith.mulf %34, %28 : vector<16x64xf32>
    %cst_22 = arith.constant 1.000000e+00 : f32
    %36 = vector.broadcast %cst_22 : f32 to vector<16x64xf32>
    %37 = arith.addf %36, %35 : vector<16x64xf32>
    %38 = arith.mulf %32, %37 : vector<16x64xf32>
    %39 = math.tanh %38 : vector<16x64xf32>
    %cst_23 = arith.constant 1.000000e+00 : f32
    %40 = vector.broadcast %cst_23 : f32 to vector<16x64xf32>
    %41 = arith.addf %40, %39 : vector<16x64xf32>
    %42 = arith.mulf %30, %41 : vector<16x64xf32>
    %43 = vector.shape_cast %42 : vector<16x64xf32> to vector<1x16x64xf32>
    %c0_24 = arith.constant 0 : index
    %c0_25 = arith.constant 0 : index
    %c0_26 = arith.constant 0 : index
    %44 = vector.load %arg5[%c0_24, %c0_25, %c0_26] : memref<1x16x64xf32, #tpu.memory_space<vmem>>, vector<1x16x64xf32>
    tpu.vector_store %arg5[%c0_24, %c0_25, %c0_26], %43 {strides = array<i32>} : memref<1x16x64xf32, #tpu.memory_space<vmem>>, vector<1x16x64xf32>,
    return
  }
  func.func @transform_0(%arg0: i32) -> (i32, i32, i32) {
    %c0_i32 = arith.constant 0 : i32
    %c0_i32_0 = arith.constant 0 : i32
    %c0_i32_1 = arith.constant 0 : i32
    return %arg0, %c0_i32, %c0_i32_0 : i32, i32, i32
  }
  func.func @transform_1(%arg0: i32) -> (i32, i32, i32) {
    %c0_i32 = arith.constant 0 : i32
    %c0_i32_0 = arith.constant 0 : i32
    %c0_i32_1 = arith.constant 0 : i32
    return %arg0, %c0_i32, %c0_i32_0 : i32, i32, i32
  }
  func.func @transform_2(%arg0: i32) -> (i32, i32, i32) {
    %c0_i32 = arith.constant 0 : i32
    %c0_i32_0 = arith.constant 0 : i32
    %c0_i32_1 = arith.constant 0 : i32
    %c0_i32_2 = arith.constant 0 : i32
    return %c0_i32, %c0_i32_0, %c0_i32_1 : i32, i32, i32
  }
  func.func @transform_3(%arg0: i32) -> (i32, i32) {
    %c0_i32 = arith.constant 0 : i32
    %c0_i32_0 = arith.constant 0 : i32
    %c0_i32_1 = arith.constant 0 : i32
    return %c0_i32, %c0_i32_0 : i32, i32
  }
  func.func @transform_4(%arg0: i32) -> (i32, i32, i32) {
    %c0_i32 = arith.constant 0 : i32
    %c0_i32_0 = arith.constant 0 : i32
    %c0_i32_1 = arith.constant 0 : i32
    return %arg0, %c0_i32, %c0_i32_0 : i32, i32, i32
  }
}

</mosaic_0001>

<bundles_post_ra>
// kernel: encoder_forward.3
= control target key start
LH: loop header
LB: loop body
LE: loop exit
PB: predicated region body
PF: predicated region fallthrough
CT: control target
= control target key end

     0   :  { %9 = vsyncpa [#allocation3], 0  ;;  %s842_s0 = inlined_call_operand.vmem [shape: f32[2,16,64], index: 0, kind: input, shape index: {}]   ;;  %s843_s1 = inlined_call_operand.vmem [shape: f32[2,16,1], index: 1, kind: input, shape index: {}]   ;;  %s844_s2 = inlined_call_operand.hbm [shape: f32[3,64,64], index: 2, kind: input, shape index: {}]   ;;  %s845_s3 = inlined_call_operand.vmem [shape: f32[1,64], index: 3, kind: input, shape index: {}]   ;;  %s846_s4 = inlined_call_operand.hbm [shape: f32[2,16,64], index: 4, kind: output, shape index: {}]  }
   0x1   :  { %10 = vsyncpa [#allocation4], 0 }
   0x2   :  { %12 = vsyncpa [#allocation4 + $0x1], 0  ;;  %s726_s15 = smov 0   ;;  %s728_s16 = smov 0  }
   0x3   :  { %s730_s17 = smov 0   ;;  %s732_s18 = smov 0  }
   0x4 LB: > { %s747_s19 = sadd.s32 4294967295, %s693_s18   ;;  %s503_s20 = sadd.s32 4294967294, %s693_s18   ;;  %s693_s18 = sphi %s732_s18, %s852_s18   ;;  %s689_s17 = sphi %s730_s17, %s851_s17   ;;  %s685_s16 = sphi %s728_s16, %s850_s16   ;;  %s681_s15 = sphi %s726_s15, %s849_s15  }
   0x5   : > { %s751_s21 = sadd.s32 1, %s693_s18   ;;  %s119_s22 = sadd.s32 1, %s689_s17 }
   0x6   : > { %s116_s23 = ssub.s32 %s693_s18, %s751_s21  ;;  %p129_p0 = scmp.ne.s32.totalorder %s689_s17, %s685_s16 }
   0x7   : > { %p117_p1 = scmp.eq.s32.totalorder %s116_s23, 0  ;;  %p130_p2 = scmp.eq.s32.totalorder %s747_s19, 1 }
   0x8   : > { %p135_p3 = scmp.ne.s32.totalorder %s685_s16, %s681_s15  ;;  %p136_p4 = scmp.eq.s32.totalorder %s503_s20, 1 }
   0x9   : > { %s762_s24 = scalar_select %p117_p1, %s689_s17, %s119_s22  }
   0xa   : > { %p764_p5 = por %p130_p2, %p129_p0  ;;  %p768_p6 = por %p136_p4, %p135_p3 }
   0xb   : > { %p504_p7 = scmp.ge.s32.totalorder %s693_s18, 1  ;;  %p143_p8 = scmp.lt.s32.totalorder %s693_s18, 3 }
   0xc   : > { %p550_p9 = scmp.eq.s32.totalorder %s747_s19, 0  ;;  %s154_s29 = sshll.u32 %s844_s2, 4  ;;  %s155_s29 = int_to_ptr.hbm [resolvable:$true] %s154_s29 }
   0xd   : > { %p144_p10 = pnand %p504_p7, %p143_p8  ;;  %s695_s30 = smov [#allocation2]  }
   0xe   : > { %s156_s5 = sshll.u32 %s695_s30, 4  ;;  %s696_s6 = smov 128   ;;  %s157_s5 = int_to_ptr.vmem [resolvable:$true] %s156_s5 }
   0xf   : > { %p542_p11 = pneg %p144_p10  ;;  %s697_s7 = smov 8  }
  0x10   : > { %191 = sbr.rel (%p144_p10) target bundleno = 324 (0x144), region = 36 }
  0x11   : > { %p543_p12 = pnand %p550_p9, %p542_p11 }
  0x13   : > { %545 = dma.hbm_to_vmem [thread:$0]  (!%p543_p12), %s155_s29, 3072, %s157_s5, [#allocation3], %s696_s6, %s696_s6, %s697_s7  }
  0x15   : > { %672 = dma.done.wait (%p550_p9), [#allocation3], 3072  }
  0x16   : > { %674 = vsyncadd (%p550_p9), [#allocation3], 4294964224  ;;  %p223_p13 = scmp.lt.s32.totalorder %s747_s19, 1  ;;  %v698_v0 = vmov 0   ;;  %v273_v2 = vld [vmem:[#allocation2 + $0x78] sm:$0xff]  ;;  %v272_v3 = vld [vmem:[#allocation2 + $0x70] sm:$0xff] }
  0x17   : > { %591 = vset.pattern.permute.xlu0 %v698_v0  ;;  %287 = vmatpush.msra.mxu0 %v273_v2  ;;  %v264_v4 = vld [vmem:[#allocation2 + $0x38] sm:$0xff]  ;;  %v271_v5 = vld [vmem:[#allocation2 + $0x68] sm:$0xff]  ;;  %v263_v6 = vld [vmem:[#allocation2 + $0x30] sm:$0xff]  ;;  %vm274_vm0 = vcmask 523264   ;;  %vm251_vm1 = vcmask 1040384   ;;  %vm330_vm2 = vcmask 1046528  }
  0x18   : > { %s786_s8 = scalar_select %p223_p13, %s747_s19, 1  ;;  %315 = vmatpush.msra.mxu1 %v264_v4  ;;  %528 = vmatpush.msra.mxu3 %v273_v2  ;;  %v262_v7 = vld [vmem:[#allocation2 + $0x28] sm:$0xff]  ;;  %v270_v8 = vld [vmem:[#allocation2 + $0x60] sm:$0xff]  ;;  %v344_v9 = vld [vmem:[#allocation2 + $0xb8] sm:$0xff] }
  0x19   : > { %288 = vmatpush.msra.mxu0 %v272_v3  ;;  %v261_v10 = vld [vmem:[#allocation2 + $0x20] sm:$0xff]  ;;  %358 = vmatpush.msra.mxu2 %v344_v9  ;;  %v269_v12 = vld [vmem:[#allocation2 + $0x58] sm:$0xff]  ;;  %v268_v14 = vld [vmem:[#allocation2 + $0x50] sm:$0xff]  ;;  %s220_s27 = sand.u32 1, %s685_s16   ;;  %s527_s29 = sshll.u32 %s747_s19, 4 }
  0x1a   : > { %s525_s9 = sshll.u32 %s786_s8, 4  ;;  %316 = vmatpush.msra.mxu1 %v263_v6  ;;  %529 = vmatpush.msra.mxu3 %v272_v3  ;;  %v260_v13 = vld [vmem:[#allocation2 + $0x18] sm:$0xff]  ;;  %v267_v15 = vld [vmem:[#allocation2 + $0x48] sm:$0xff]  ;;  %v259_v16 = vld [vmem:[#allocation2 + $0x10] sm:$0xff]  ;;  %s509_s28 = sshll.u32 %s220_s27, 4 }
  0x1b   : > { %s232_s12 = scalar_lea.vmem %s843_s1, %s525_s9  ;;  %289 = vmatpush.msra.mxu0 %v271_v5  ;;  %v343_v17 = vld [vmem:[#allocation2 + $0xb0] sm:$0xff]  ;;  %v266_v18 = vld [vmem:[#allocation2 + $0x40] sm:$0xff]  ;;  %v258_v19 = vld [vmem:[#allocation2 + $0x8] sm:$0xff]  ;;  %s227_s20 = scalar_lea.vmem %s842_s0, %s525_s9 }
  0x1c   : > { %v235_v1 = vld [vmem:[%s232_s12] sm:$0xff]  ;;  %v236_v11 = vld [vmem:[%s232_s12 + $0x8] sm:$0xff]  ;;  %317 = vmatpush.msra.mxu1 %v262_v7  ;;  %530 = vmatpush.msra.mxu3 %v271_v5  ;;  %v340_v23 = vld [vmem:[#allocation2 + $0x98] sm:$0xff]  ;;  %s413_s6 = scalar_lea.hbm %s846_s4, %s527_s29  ;;  %s222_s7 = scalar_lea.vmem [#allocation5], %s509_s28 }
  0x1d   : > { %239 = vperm.xlu0 %591, %v235_v1   ;;  %290 = vmatpush.msra.mxu0 %v270_v8  ;;  %v342_v20 = vld [vmem:[#allocation2 + $0xa8] sm:$0xff]  ;;  %v257_v21 = vld [vmem:[#allocation2] sm:$0xff]  ;;  %v339_v24 = vld [vmem:[#allocation2 + $0x90] sm:$0xff]  ;;  %s414_s8 = sshll.u32 %s222_s7, 4  ;;  %s416_s9 = sshll.u32 %s413_s6, 4  ;;  %s415_s8 = int_to_ptr.vmem [resolvable:$true] %s414_s8  ;;  %s417_s9 = int_to_ptr.hbm [resolvable:$true] %s416_s9 }
  0x1e   : > { %318 = vmatpush.msra.mxu1 %v261_v10  ;;  %531 = vmatpush.msra.mxu3 %v270_v8  ;;  %v341_v22 = vld [vmem:[#allocation2 + $0xa0] sm:$0xff]  ;;  %v338_v25 = vld [vmem:[#allocation2 + $0x88] sm:$0xff]  ;;  %s402_s19 = scalar_lea.sflag [#allocation4], %s220_s27  ;;  %s641_s10 = sshra.s32 %s417_s9, 4  ;;  %s642_s10 = int_to_ptr.hbm [resolvable:$true] %s641_s10 }
  0x1f   : > { %291 = vmatpush.msra.mxu0 %v269_v12  ;;  %359 = vmatpush.msra.mxu2 %v343_v17  ;;  %v337_v26 = vld [vmem:[#allocation2 + $0x80] sm:$0xff]  ;;  %v234_v32 = vld [vmem:[%s227_s20 + $0x8] sm:$0xff]  ;;  %s643_s11 = scalar_lea.hbm %s642_s10, 16  ;;  %s647_s14 = scalar_lea.hbm %s846_s4, 32 }
  0x20   : > { %319 = vmatpush.msra.mxu1 %v260_v13  ;;  %532 = vmatpush.msra.mxu3 %v269_v12  ;;  %v233_v27 = vld [vmem:[%s227_s20] sm:$0xff]  ;;  %p644_p0 = scmp.ne.s32.totalorder %s642_s10, %s643_s11  ;;  %p648_p3 = scmp.lt.s32.totalorder %s642_s10, %s846_s4 }
  0x21   : > { %292 = vmatpush.msra.mxu0 %v268_v14  ;;  %360 = vmatpush.msra.mxu2 %v342_v20  ;;  %v592_v44 = vld [vmem:[%s845_s3] ss:$0 sm:$0xff]  ;;  %p649_p4 = scmp.lt.s32.totalorder %s647_s14, %s643_s11 }
  0x22   : > { %533 = vmatpush.msra.mxu3 %v268_v14  ;;  %320 = vmatpush.msra.mxu1 %v259_v16  ;;  %p645_p1 = pnand %p644_p0, %p764_p5 }
  0x23   : > { %293 = vmatpush.msra.mxu0 %v267_v15  ;;  %361 = vmatpush.msra.mxu2 %v341_v22  ;;  %p650_p7 = por %p649_p4, %p648_p3 }
  0x24   : > { %534 = vmatpush.msra.mxu3 %v267_v15  ;;  %321 = vmatpush.msra.mxu1 %v258_v19  ;;  %p646_p2 = pneg %p645_p1 }
  0x25   : > { %244 = vperm.xlu0 %591, %v236_v11   ;;  %294 = vmatpush.msra.mxu0 %v266_v18 }
  0x26   : > { %535 = vmatpush.msra.mxu3 %v266_v18  ;;  %322 = vmatpush.msra.mxu1 %v257_v21  ;;  %p651_p8 = pnand %p650_p7, %p646_p2 }
  0x27   : > { %362 = vmatpush.msra.mxu2 %v340_v23 }
  0x29   : > { %363 = vmatpush.msra.mxu2 %v339_v24 }
  0x2b   : > { %364 = vmatpush.msra.mxu2 %v338_v25 }
  0x2d   : > { %365 = vmatpush.msra.mxu2 %v337_v26 }
  0x8f   : > { %v240_v28 = vpop.permute.xlu0 %239 }
  0x90   : > { %v247_v29 = vmul.f32 %v240_v28, %v233_v27 }
  0x92   : > { %514 = vmatmul.msk.f32.vlgmr.msra.gmra.mxu0 %vm274_vm0, %v247_v29  ;;  %v252_v30 = vrot.slane %v247_v29, 7  ;;  %v331_v35 = vrot.slane %v247_v29, 1 }
  0x94   : > { %v256_v31 = vsel %vm251_vm1, 0.0, %v252_v30 }
  0x95   : > { %516 = vmatmul.msk.f32.vlgmr.msra.gmra.mxu1 %vm274_vm0, %v256_v31 }
  0x97   : > { %v245_v33 = vpop.permute.xlu0 %244 }
  0x98   : > { %v248_v34 = vmul.f32 %v245_v33, %v234_v32 }
  0x9a   : > { %v253_v36 = vrot.slane %v248_v34, 7  ;;  %v332_v37 = vrot.slane %v248_v34, 1  ;;  %515 = vmatmul.msk.f32.vlgmr.msra.gmra.mxu3 %vm274_vm0, %v248_v34 }
  0x9c   : > { %v254_v38 = vsel %vm251_vm1, %v252_v30, %v253_v36  ;;  %v333_v39 = vsel %vm330_vm2, %v331_v35, %v332_v37  ;;  %v335_v40 = vsel %vm330_vm2, %v332_v37, 0.0 }
  0x9d   : > { %517 = vmatmul.msk.f32.gmra.mxu1 %vm274_vm0, %v254_v38  ;;  %518 = vmatmul.msk.f32.vlgmr.msra.gmra.mxu2 %vm274_vm0, %v333_v39 }
  0xa5   : > { %519 = vmatmul.msk.f32.gmra.mxu2 %vm274_vm0, %v335_v40 }
 0x10f   : > { %v296_v42 = vpop.f32.mrf.mxu0 }
 0x112   : > { %v324_v41 = vpop.f32.mrf.mxu1 }
 0x113   : > { %v325_v43 = vadd.f32 %v324_v41, %v296_v42 }
 0x11a   : > { %v327_v50 = vpop.f32.mrf.mxu1 }
 0x11d   : > { %v299_v48 = vpop.f32.mrf.mxu3 }
 0x11e   : > { %v328_v51 = vadd.f32 %v327_v50, %v299_v48 }
 0x120   : > { %v367_v45 = vpop.f32.mrf.mxu2 }
 0x121   : > { %v373_v46 = vadd.f32 %v367_v45, %v325_v43 }
 0x123   : > { %v379_v47 = vadd.f32 %v592_v44, %v373_v46 }
 0x125   : > { %v385_v49 = vmul.f32 0.044715, %v379_v47  ;;  %v383_v54 = vmul.f32 0.7978846, %v379_v47  ;;  %v381_v1 = vmul.f32 0.5, %v379_v47 }
 0x127   : > { %v387_v52 = vmul.f32 %v385_v49, %v379_v47 }
 0x128   : > { %v370_v53 = vpop.f32.mrf.mxu2 }
 0x129   : > { %v389_v55 = vadd.f32 1.0, %v387_v52  ;;  %v374_v56 = vadd.f32 %v370_v53, %v328_v51 }
 0x12b   : > { %v391_v57 = vmul.f32 %v389_v55, %v383_v54  ;;  %v380_v58 = vadd.f32 %v592_v44, %v374_v56 }
 0x12d   : > { %593 = vtanh.f32 %v391_v57  ;;  %v386_v59 = vmul.f32 0.044715, %v380_v58  ;;  %v384_v61 = vmul.f32 0.7978846, %v380_v58  ;;  %v382_v5 = vmul.f32 0.5, %v380_v58 }
 0x12f   : > { %v388_v60 = vmul.f32 %v386_v59, %v380_v58 }
 0x131   : > { %v390_v62 = vadd.f32 1.0, %v388_v60 }
 0x133   : > { %v594_v63 = vpop.eup %593  ;;  %v392_v0 = vmul.f32 %v390_v62, %v384_v61 }
 0x134   : > { %v395_v2 = vadd.f32 1.0, %v594_v63 }
 0x135   : > { %595 = vtanh.f32 %v392_v0 }
 0x136   : > { %v397_v3 = vmul.f32 %v395_v2, %v381_v1 }
 0x138   : > { %399 = vst.msk [vmem:[%s222_s7] sm:$0xff] %vm274_vm0, %v397_v3 }
 0x13b   : > { %v596_v4 = vpop.eup %595 }
 0x13c   : > { %v396_v6 = vadd.f32 1.0, %v596_v4 }
 0x13e   : > { %v398_v7 = vmul.f32 %v396_v6, %v382_v5 }
 0x140   : > { %400 = vst.msk [vmem:[%s222_s7 + $0x8] sm:$0xff] %vm274_vm0, %v398_v7 }
 0x141   : > { %654 = shalt.err (!%p651_p8)
}
 0x142   : > { %s699_s23 = smov 128   ;;  %s700_s27 = smov 8  }
 0x143   : > { %540 = dma.vmem_to_hbm [thread:$0]  (%p764_p5), %s415_s8, 256, %s417_s9, %s402_s19, %s699_s23, %s699_s23, %s700_s27  }
 0x144 PF: > { %p552_p9 = scmp.ge.s32.totalorder %s693_s18, 2  ;;  %s431_s28 = sand.u32 1, %s681_s15  }
 0x145   : > { %s432_s29 = scalar_lea.sflag [#allocation4], %s431_s28 }
 0x146   : > { %p547_p10 = pnand %p552_p9, %p768_p6 }
 0x148   : > { %p548_p11 = pneg %p547_p10 }
 0x14a   : > { %676 = dma.done.wait (%p548_p11), %s432_s29, 256  }
 0x14b   : > { %678 = vsyncadd (%p548_p11), %s432_s29, 4294967040  ;;  %p15_p12 = scmp.ge.s32.totalorder %s751_s21, 4   ;;  %s849_s15 = smov %s685_s16 }
 0x14c   : > { %s850_s16 = smov %s689_s17  ;;  %s851_s17 = smov %s762_s24 }
 0x14d   : > { %s852_s18 = smov %s751_s21  ;;  %17 = sbr.rel (!%p15_p12) target bundleno = 4 (0x4), region = 81 }
 0x152   :  { %438 = vsyncpa [#allocation3], 1 }
 0x153   :  { %440 = vsyncpa [#allocation3 + $0x1], 1 }
 0x154   :  { %441 = vsyncpa [#allocation4], 1 }
 0x155   :  { %443 = vsyncpa [#allocation4 + $0x1], 1 }

// kernel: encoder_forward.2
= control target key start
LH: loop header
LB: loop body
LE: loop exit
PB: predicated region body
PF: predicated region fallthrough
CT: control target
= control target key end

     0   :  { %9 = vsyncpa [#allocation3], 0  ;;  %s598_s15 = smov 0   ;;  %s635_s0 = inlined_call_operand.vmem [shape: f32[2,16,32], index: 0, kind: input, shape index: {}]   ;;  %s636_s1 = inlined_call_operand.vmem [shape: f32[2,16,1], index: 1, kind: input, shape index: {}]   ;;  %s637_s2 = inlined_call_operand.hbm [shape: f32[3,32,64], index: 2, kind: input, shape index: {}]   ;;  %s638_s3 = inlined_call_operand.vmem [shape: f32[1,64], index: 3, kind: input, shape index: {}]   ;;  %s639_s4 = inlined_call_operand.vmem [shape: f32[2,16,64], index: 4, kind: output, shape index: {}]  }
   0x1 LB: > { %s151_s18 = sshll.u32 %s637_s2, 4  ;;  %s471_s19 = sadd.s32 4294967295, %s567_s15   ;;  %s567_s15 = sphi %s598_s15, %s15_s15   ;;  %s152_s18 = int_to_ptr.hbm [resolvable:$true] %s151_s18 }
   0x2   : > { %p473_p0 = scmp.ge.s32.totalorder %s567_s15, 1  ;;  %p140_p1 = scmp.lt.s32.totalorder %s567_s15, 3 }
   0x3   : > { %p507_p2 = scmp.eq.s32.totalorder %s471_s19, 0  ;;  %s569_s20 = smov [#allocation2]  }
   0x4   : > { %p141_p3 = pnand %p473_p0, %p140_p1  ;;  %s153_s21 = sshll.u32 %s569_s20, 4  ;;  %s154_s21 = int_to_ptr.vmem [resolvable:$true] %s153_s21 }
   0x5   : > { %s570_s22 = smov 128   ;;  %s571_s23 = smov 8  }
   0x6   : > { %p503_p4 = pneg %p141_p3  ;;  %188 = sbr.rel (%p141_p3) target bundleno = 310 (0x136), region = 36 }
   0x8   : > { %p504_p5 = pnand %p507_p2, %p503_p4 }
   0xa   : > { %506 = dma.hbm_to_vmem [thread:$0]  (!%p504_p5), %s152_s18, 1536, %s154_s21, [#allocation3], %s570_s22, %s570_s22, %s571_s23  }
   0xb   : > { %562 = dma.done.wait (%p507_p2), [#allocation3], 1536  }
   0xc   : > { %564 = vsyncadd (%p507_p2), [#allocation3], 4294965760  ;;  %p220_p6 = scmp.lt.s32.totalorder %s471_s19, 1  ;;  %v572_v0 = vmov 0   ;;  %v267_v2 = vld [vmem:[#allocation2 + $0x38] sm:$0xff]  ;;  %v266_v3 = vld [vmem:[#allocation2 + $0x30] sm:$0xff] }
   0xd   : > { %521 = vset.pattern.permute.xlu0 %v572_v0  ;;  %285 = vmatpush.msra.mxu0 %v267_v2  ;;  %v262_v4 = vld [vmem:[#allocation2 + $0x18] sm:$0xff]  ;;  %v265_v5 = vld [vmem:[#allocation2 + $0x28] sm:$0xff]  ;;  %v261_v7 = vld [vmem:[#allocation2 + $0x10] sm:$0xff]  ;;  %vm268_vm0 = vcmask 261120   ;;  %vm253_vm1 = vcmask 1040384   ;;  %vm324_vm2 = vcmask 1046528  }
   0xe   : > { %s641_s19 = smov (!%p220_p6, %s471_s19), 1  ;;  %313 = vmatpush.msra.mxu1 %v262_v4  ;;  %495 = vmatpush.msra.mxu3 %v267_v2  ;;  %v264_v8 = vld [vmem:[#allocation2 + $0x20] sm:$0xff]  ;;  %v260_v9 = vld [vmem:[#allocation2 + $0x8] sm:$0xff]  ;;  %v334_v11 = vld [vmem:[#allocation2 + $0x58] sm:$0xff]  ;;  %vm389_vm3 = vcmask 523264  }
   0xf   : > { %s609_s24 = sshll.u32 %s641_s19, 4  ;;  %286 = vmatpush.msra.mxu0 %v266_v3  ;;  %v259_v10 = vld [vmem:[#allocation2] sm:$0xff]  ;;  %352 = vmatpush.msra.mxu2 %v334_v11  ;;  %v333_v12 = vld [vmem:[#allocation2 + $0x50] sm:$0xff]  ;;  %v332_v13 = vld [vmem:[#allocation2 + $0x48] sm:$0xff] }
  0x10   : > { %s229_s27 = scalar_lea.vmem %s636_s1, %s609_s24  ;;  %496 = vmatpush.msra.mxu3 %v266_v3  ;;  %314 = vmatpush.msra.mxu1 %v261_v7  ;;  %v331_v14 = vld [vmem:[#allocation2 + $0x40] sm:$0xff]  ;;  %s224_s30 = scalar_lea.vmem %s635_s0, %s609_s24 }
  0x11   : > { %v237_v1 = vld [vmem:[%s229_s27] sm:$0xff]  ;;  %287 = vmatpush.msra.mxu0 %v265_v5  ;;  %v238_v6 = vld [vmem:[%s229_s27 + $0x8] sm:$0xff]  ;;  %353 = vmatpush.msra.mxu2 %v333_v12  ;;  %s234_s9 = scalar_lea.vmem %s639_s4, %s609_s24 }
  0x12   : > { %241 = vperm.xlu0 %521, %v237_v1   ;;  %497 = vmatpush.msra.mxu3 %v265_v5  ;;  %v235_v15 = vld [vmem:[%s224_s30] sm:$0xff]  ;;  %v236_v20 = vld [vmem:[%s224_s30 + $0x8] sm:$0xff] }
  0x13   : > { %288 = vmatpush.msra.mxu0 %v264_v8  ;;  %315 = vmatpush.msra.mxu1 %v260_v9  ;;  %v522_v32 = vld [vmem:[%s638_s3] ss:$0 sm:$0xff] }
  0x14   : > { %498 = vmatpush.msra.mxu3 %v264_v8  ;;  %354 = vmatpush.msra.mxu2 %v332_v13 }
  0x15   : > { %316 = vmatpush.msra.mxu1 %v259_v10 }
  0x16   : > { %355 = vmatpush.msra.mxu2 %v331_v14 }
  0x1a   : > { %246 = vperm.xlu0 %521, %v238_v6  }
  0x84   : > { %v242_v16 = vpop.permute.xlu0 %241 }
  0x85   : > { %v249_v17 = vmul.f32 %v242_v16, %v235_v15 }
  0x87   : > { %484 = vmatmul.msk.f32.vlgmr.msra.gmra.mxu0 %vm268_vm0, %v249_v17  ;;  %v254_v18 = vrot.slane %v249_v17, 7  ;;  %v325_v23 = vrot.slane %v249_v17, 1 }
  0x89   : > { %v258_v19 = vsel %vm253_vm1, 0.0, %v254_v18 }
  0x8a   : > { %486 = vmatmul.msk.f32.vlgmr.msra.gmra.mxu1 %vm268_vm0, %v258_v19 }
  0x8c   : > { %v247_v21 = vpop.permute.xlu0 %246 }
  0x8d   : > { %v250_v22 = vmul.f32 %v247_v21, %v236_v20 }
  0x8f   : > { %v255_v24 = vrot.slane %v250_v22, 7  ;;  %v326_v25 = vrot.slane %v250_v22, 1  ;;  %485 = vmatmul.msk.f32.vlgmr.msra.gmra.mxu3 %vm268_vm0, %v250_v22 }
  0x91   : > { %v256_v26 = vsel %vm253_vm1, %v254_v18, %v255_v24  ;;  %v327_v27 = vsel %vm324_vm2, %v325_v23, %v326_v25  ;;  %v329_v28 = vsel %vm324_vm2, %v326_v25, 0.0 }
  0x92   : > { %487 = vmatmul.msk.f32.gmra.mxu1 %vm268_vm0, %v256_v26  ;;  %488 = vmatmul.msk.f32.vlgmr.msra.gmra.mxu2 %vm268_vm0, %v327_v27 }
  0x9a   : > { %489 = vmatmul.msk.f32.gmra.mxu2 %vm268_vm0, %v329_v28 }
 0x104   : > { %v290_v30 = vpop.f32.mrf.mxu0 }
 0x107   : > { %v318_v29 = vpop.f32.mrf.mxu1 }
 0x108   : > { %v319_v31 = vadd.f32 %v318_v29, %v290_v30 }
 0x10f   : > { %v321_v38 = vpop.f32.mrf.mxu1 }
 0x112   : > { %v293_v36 = vpop.f32.mrf.mxu3 }
 0x113   : > { %v322_v39 = vadd.f32 %v321_v38, %v293_v36 }
 0x115   : > { %v357_v33 = vpop.f32.mrf.mxu2 }
 0x116   : > { %v363_v34 = vadd.f32 %v357_v33, %v319_v31 }
 0x118   : > { %v369_v35 = vadd.f32 %v522_v32, %v363_v34 }
 0x11a   : > { %v375_v37 = vmul.f32 0.044715, %v369_v35  ;;  %v373_v42 = vmul.f32 0.7978846, %v369_v35  ;;  %v371_v53 = vmul.f32 0.5, %v369_v35 }
 0x11c   : > { %v377_v40 = vmul.f32 %v375_v37, %v369_v35 }
 0x11d   : > { %v360_v41 = vpop.f32.mrf.mxu2 }
 0x11e   : > { %v379_v43 = vadd.f32 1.0, %v377_v40  ;;  %v364_v44 = vadd.f32 %v360_v41, %v322_v39 }
 0x120   : > { %v381_v45 = vmul.f32 %v379_v43, %v373_v42  ;;  %v370_v46 = vadd.f32 %v522_v32, %v364_v44 }
 0x122   : > { %523 = vtanh.f32 %v381_v45  ;;  %v376_v47 = vmul.f32 0.044715, %v370_v46  ;;  %v374_v49 = vmul.f32 0.7978846, %v370_v46  ;;  %v372_v57 = vmul.f32 0.5, %v370_v46 }
 0x124   : > { %v378_v48 = vmul.f32 %v376_v47, %v370_v46 }
 0x126   : > { %v380_v50 = vadd.f32 1.0, %v378_v48 }
 0x128   : > { %v524_v51 = vpop.eup %523  ;;  %v382_v52 = vmul.f32 %v380_v50, %v374_v49 }
 0x129   : > { %v385_v54 = vadd.f32 1.0, %v524_v51 }
 0x12a   : > { %525 = vtanh.f32 %v382_v52 }
 0x12b   : > { %v387_v55 = vmul.f32 %v385_v54, %v371_v53 }
 0x12d   : > { %390 = vst.msk [vmem:[%s234_s9] sm:$0xff] %vm389_vm3, %v387_v55 }
 0x130   : > { %v526_v56 = vpop.eup %525 }
 0x131   : > { %v386_v58 = vadd.f32 1.0, %v526_v56 }
 0x133   : > { %v388_v59 = vmul.f32 %v386_v58, %v372_v57 }
 0x135   : > { %391 = vst.msk [vmem:[%s234_s9 + $0x8] sm:$0xff] %vm389_vm3, %v388_v59 }
 0x136 PF: > { %s15_s15 = sadd.s32 1, %s567_s15  }
 0x137   : > { %p12_p7 = scmp.ge.s32.totalorder %s15_s15, 4  }
 0x139   :  { %14 = sbr.rel (!%p12_p7) target bundleno = 1 (0x1), region = 76 }
 0x13e   :  { %413 = vsyncpa [#allocation3], 1 }
 0x13f   :  { %415 = vsyncpa [#allocation3 + $0x1], 1 }

</bundles_post_ra>
